<compile_context>
chip_gen: v6e
topology: v6e:2x2x1
jax: 0.10.0
libtpu: 0.0.40
codegen_flags: <defaults>
</compile_context>

<pallas_src>
import functools
import math

import jax
import jax.numpy as jnp
from jax.experimental import pallas as pl
from jax.experimental.pallas import tpu as pltpu


_LANE = 128
_VMEM_LIMIT = 48 * 1024 * 1024   # safe on v5e/v6e (128 MiB) and v7x (64 MiB) physical VMEM
_NEG_OVER_8 = -9.0e15 / 8.0      # torch mask value with the /8 softmax scale folded in


def _tile(dim, target):
    """Largest-usable tile: `target` if it divides `dim`, else the full dim.
    TODO(synk): ragged (non-divisible) dims fall back to one full-size block."""
    if dim <= target or dim % target != 0:
        return dim
    return target


def _pad_width(n):
    """Round a feature width up to a lane-dense multiple of 128."""
    return max(_LANE, ((n + _LANE - 1) // _LANE) * _LANE)


# -----------------------------------------------------------------------------
# Tiled matmul (+ optional bias):  out = A @ B [+ bias]
# -----------------------------------------------------------------------------
def _matmul_kernel(a_ref, b_ref, o_ref, acc_ref):
    @pl.when(pl.program_id(2) == 0)
    def _():
        acc_ref[...] = jnp.zeros_like(acc_ref)

    acc_ref[...] += jnp.dot(a_ref[...], b_ref[...], preferred_element_type=jnp.float32)

    @pl.when(pl.program_id(2) == pl.num_programs(2) - 1)
    def _():
        o_ref[...] = acc_ref[...].astype(o_ref.dtype)


def _matmul_bias_kernel(a_ref, b_ref, bias_ref, o_ref, acc_ref):
    @pl.when(pl.program_id(2) == 0)
    def _():
        acc_ref[...] = jnp.zeros_like(acc_ref)

    acc_ref[...] += jnp.dot(a_ref[...], b_ref[...], preferred_element_type=jnp.float32)

    @pl.when(pl.program_id(2) == pl.num_programs(2) - 1)
    def _():
        o_ref[...] = (acc_ref[...] + bias_ref[...]).astype(o_ref.dtype)


def pallas_matmul(a, b, bias=None, *, tm=256, tk=512, tn=256):
    M, K = a.shape
    K2, N = b.shape
    assert K == K2
    tm = _tile(M, tm)
    tk = _tile(K, tk)
    tn = _tile(N, tn)
    grid = (M // tm, N // tn, K // tk)

    in_specs = [
        pl.BlockSpec((tm, tk), lambda i, j, k: (i, k)),
        pl.BlockSpec((tk, tn), lambda i, j, k: (k, j)),
    ]
    args = [a, b]
    kernel = _matmul_kernel
    if bias is not None:
        in_specs.append(pl.BlockSpec((1, tn), lambda i, j, k: (0, j)))
        args.append(bias.reshape(1, N).astype(jnp.float32))
        kernel = _matmul_bias_kernel

    return pl.pallas_call(
        kernel,
        out_shape=jax.ShapeDtypeStruct((M, N), a.dtype),
        grid_spec=pltpu.PrefetchScalarGridSpec(
            num_scalar_prefetch=0,
            grid=grid,
            in_specs=in_specs,
            out_specs=pl.BlockSpec((tm, tn), lambda i, j, k: (i, j)),
            scratch_shapes=[pltpu.VMEM((tm, tn), jnp.float32)],
        ),
        compiler_params=pltpu.CompilerParams(
            dimension_semantics=("parallel", "parallel", "arbitrary"),
            vmem_limit_bytes=_VMEM_LIMIT,
        ),
    )(*args)


# -----------------------------------------------------------------------------
# GCN path:  out = adj @ (x @ W) [+ bias]
# -----------------------------------------------------------------------------
def gcn_forward(x, adj, W, bias=None):
    in_f, out_f = W.shape
    out_p = _pad_width(out_f)
    Wp = W if out_p == out_f else jnp.pad(W, ((0, 0), (0, out_p - out_f)))
    bp = None
    if bias is not None:
        bp = bias if out_p == out_f else jnp.pad(bias, (0, out_p - out_f))

    # Pick the association that keeps the N^2-sized matmul contracting the smaller feature dim.
    if out_f <= in_f:
        support = pallas_matmul(x, Wp)               # X@W hoisted: computed exactly once
        out = pallas_matmul(adj, support, bias=bp)   # (N, out_p)
    else:
        ax = pallas_matmul(adj, x)                   # (N, in_f)
        out = pallas_matmul(ax, Wp, bias=bp)         # (N, out_p)
    return out if out_p == out_f else out[:, :out_f]


# -----------------------------------------------------------------------------
# Attention (GAT-like) path
# -----------------------------------------------------------------------------
def _gat_attention_kernel(adj_ref, hq_ref, h_ref, a_ref, even_mask_ref, col_term_ref,
                          out_ref, *, concat):
    """One query-row block of the attention path.

    The torch repeat/view/mul construction is equivalent (for even N) to:
        e[i, 2m]   = (sum_f h[i,f]^2            * a[f]) / 8   -> row term (computed here)
        e[i, 2m+1] = (sum_f h[m,f] * h[m+N/2,f] * a[f]) / 8   -> column term (col_term input)
    logits = where(adj>0, e, -9e15/8); att = softmax(logits); out = att @ h [; ELU].
    """
    h_q = hq_ref[...].astype(jnp.float32)                                  # (Tq, F)
    a_row = a_ref[...].astype(jnp.float32)                                 # (1, F)

    # Row-dependent (even-column) logits; /8 folded in.  VPU mul + lane reduce, keeps MXU free.
    e_even = jnp.sum(h_q * h_q * a_row, axis=-1, keepdims=True) * 0.125    # (Tq, 1)

    # even_mask is 1.0 on even columns / 0.0 on odd columns; col_term already holds the
    # (scaled) odd-column values and zeros on even columns -> single fused multiply-add.
    e = e_even * even_mask_ref[...] + col_term_ref[...]                    # (Tq, N) via broadcast
    logits = jnp.where(adj_ref[...] > 0, e, _NEG_OVER_8)

    m = jnp.max(logits, axis=-1, keepdims=True)
    p = jnp.exp(logits - m)
    # Exact per-row normalization: Tq divides (negligible), then an N^2 broadcast multiply.
    inv = 1.0 / jnp.sum(p, axis=-1, keepdims=True)
    att = p * inv
    # TODO(synk): F.dropout(att, dropout) is identity here (inference / training=False).

    h_prime = jnp.dot(att, h_ref[...].astype(jnp.float32),
                      preferred_element_type=jnp.float32)                  # (Tq, F)
    if concat:
        # F.elu (alpha=1): x if x > 0 else exp(x) - 1
        h_prime = jnp.where(h_prime > 0, h_prime,
                            jnp.exp(jnp.minimum(h_prime, 0.0)) - 1.0)
    out_ref[...] = h_prime.astype(out_ref.dtype)


def gat_forward(x, adj, W, a_vec, *, concat, tq=256):
    N = adj.shape[0]
    assert N % 2 == 0, "exact torch semantics of this layer require an even node count"
    in_f, out_f = W.shape
    out_p = _pad_width(out_f)
    Wp = W if out_p == out_f else jnp.pad(W, ((0, 0), (0, out_p - out_f)))
    a_row = a_vec.reshape(out_f)
    if out_p != out_f:
        a_row = jnp.pad(a_row, (0, out_p - out_f))
    a_row = a_row.reshape(1, out_p).astype(jnp.float32)

    # h = X @ W, hoisted into its own tiled matmul; reused by every attention row block.
    h = pallas_matmul(x, Wp)                                               # (N, out_p)

    # Odd-column logit values: e[:, 2m+1] = (h[m] . (h[m+N/2] * a)) / 8.
    # O(N*F) reduction + index interleave as wrapper glue (negligible vs N^2 kernel work).
    half = N // 2
    odd_vals = jnp.sum(h[:half].astype(jnp.float32) * h[half:].astype(jnp.float32) * a_row,
                       axis=1) * 0.125                                     # (N/2,)
    col_term = jnp.zeros((N,), jnp.float32).at[1::2].set(odd_vals).reshape(1, N)
    even_mask = (jnp.arange(N) % 2 == 0).astype(jnp.float32).reshape(1, N)

    tq = _tile(N, tq)
    grid = (N // tq,)
    kernel = functools.partial(_gat_attention_kernel, concat=concat)
    out = pl.pallas_call(
        kernel,
        out_shape=jax.ShapeDtypeStruct((N, out_p), x.dtype),
        grid_spec=pltpu.PrefetchScalarGridSpec(
            num_scalar_prefetch=0,
            grid=grid,
            in_specs=[
                pl.BlockSpec((tq, N), lambda i: (i, 0)),        # adj row block (streamed)
                pl.BlockSpec((tq, out_p), lambda i: (i, 0)),    # h query rows
                pl.BlockSpec((N, out_p), lambda i: (0, 0)),     # full h (keys/values)
                pl.BlockSpec((1, out_p), lambda i: (0, 0)),     # attention vector a
                pl.BlockSpec((1, N), lambda i: (0, 0)),         # even-column 0/1 mask
                pl.BlockSpec((1, N), lambda i: (0, 0)),         # odd-column logit terms
            ],
            out_specs=pl.BlockSpec((tq, out_p), lambda i: (i, 0)),
        ),
        compiler_params=pltpu.CompilerParams(
            dimension_semantics=("parallel",),
            vmem_limit_bytes=_VMEM_LIMIT,
        ),
    )(adj, h, h, a_row, even_mask, col_term)
    return out if out_p == out_f else out[:, :out_f]


# -----------------------------------------------------------------------------
# Module wrapper
# -----------------------------------------------------------------------------
class GraphConvolution:
    """JAX/Pallas port of the PyTorch GraphConvolution module (inference mode)."""

    def __init__(self, in_features, out_features, nheads, dropout, bias=False,
                 alpha=0.2, concat=True, attencion=False, key=None):
        self.in_features = in_features
        self.out_features = out_features
        self.nheads = nheads
        self.dropout = dropout
        self.alpha = alpha
        self.concat = concat
        self.attencion = attencion

        if key is None:
            key = jax.random.PRNGKey(0)
        kW, ka, ka1, kb = jax.random.split(key, 4)

        gain = 1.414

        def xavier_uniform(k, shape):
            fan_out, fan_in = shape[0], shape[1]   # torch convention for 2-D tensors
            bound = gain * math.sqrt(6.0 / (fan_in + fan_out))
            return jax.random.uniform(k, shape, jnp.float32, -bound, bound)

        self.W = xavier_uniform(kW, (in_features, out_features))
        self.a = xavier_uniform(ka, (out_features, 1))
        self.a_1 = xavier_uniform(ka1, (out_features, 1))
        if bias:
            stdv = 1.0 / math.sqrt(out_features)
            self.bias = jax.random.uniform(kb, (out_features,), jnp.float32, -stdv, stdv)
        else:
            self.bias = None

    def __call__(self, x, adj):
        if self.attencion:
            a_vec = self.a if self.concat else self.a_1
            return gat_forward(x, adj, self.W, a_vec, concat=self.concat)
        return gcn_forward(x, adj, self.W, self.bias)


# -----------------------------------------------------------------------------
# Pure-JAX references that mimic the torch ops verbatim (for correctness check)
# -----------------------------------------------------------------------------
def _mm(a, b):
    return jnp.matmul(a, b, precision=jax.lax.Precision.HIGHEST)


def _ref_gcn(x, adj, W, bias=None):
    out = _mm(adj, _mm(x, W))
    return out if bias is None else out + bias


def _ref_gat(x, adj, W, a_vec, concat):
    h = _mm(x, W)
    N, F = h.shape
    A = jnp.tile(h, (1, N)).reshape(N * N, -1)          # h.repeat(1, N).view(N*N, -1)
    B = jnp.tile(h, (N, 1))                             # h.repeat(N, 1)
    a_in = jnp.concatenate([A, B], axis=1).reshape(N, -1, F)
    half = a_in.shape[1] // 2
    a_in = (a_in[:, :half] * a_in[:, half:]).reshape(N, -1, F)
    e = jnp.einsum("nkf,f->nk", a_in, a_vec.reshape(F),
                   precision=jax.lax.Precision.HIGHEST)
    att = jnp.where(adj > 0, e, -9.0e15)
    att = jax.nn.softmax(att / 8.0, axis=1)
    hp = _mm(att, h)
    return jax.nn.elu(hp) if concat else hp


# -----------------------------------------------------------------------------
if __name__ == "__main__":
    key = jax.random.PRNGKey(0)
    k_x, k_adj, k_mod = jax.random.split(key, 3)

    N, in_f, out_f, nheads, dropout = 16, 32, 32, 4, 0.5

    x = jax.random.normal(k_x, (N, in_f), jnp.float32)
    adj = (jax.random.uniform(k_adj, (N, N)) > 0.5).astype(jnp.float32)
    adj = adj + jnp.eye(N, dtype=jnp.float32)           # ensure each node attends to itself

    # 1) default path: attencion=False, bias=False
    gc = GraphConvolution(in_f, out_f, nheads, dropout, bias=False, key=k_mod)
    out_gcn = jax.block_until_ready(gc(x, adj))
    assert jnp.allclose(out_gcn, _ref_gcn(x, adj, gc.W), atol=2e-3, rtol=2e-3)

    # 2) attencion=False, bias=True
    gc_b = GraphConvolution(in_f, out_f, nheads, dropout, bias=True, key=k_mod)
    out_gcn_b = jax.block_until_ready(gc_b(x, adj))
    assert jnp.allclose(out_gcn_b, _ref_gcn(x, adj, gc_b.W, gc_b.bias), atol=2e-3, rtol=2e-3)

    # 3) attencion=True, concat=True (uses self.a, ELU output)
    gat_c = GraphConvolution(in_f, out_f, nheads, dropout, attencion=True, concat=True, key=k_mod)
    out_gat_c = jax.block_until_ready(gat_c(x, adj))
    assert jnp.allclose(out_gat_c, _ref_gat(x, adj, gat_c.W, gat_c.a, True), atol=2e-3, rtol=2e-3)

    # 4) attencion=True, concat=False (uses self.a_1, no ELU)
    gat_n = GraphConvolution(in_f, out_f, nheads, dropout, attencion=True, concat=False, key=k_mod)
    out_gat_n = jax.block_until_ready(gat_n(x, adj))
    assert jnp.allclose(out_gat_n, _ref_gat(x, adj, gat_n.W, gat_n.a_1, False), atol=2e-3, rtol=2e-3)

    print("KERNEL_OK")
</pallas_src>

<mosaic_0001>
module attributes {stable_mosaic.version = 11 : i64} {
  func.func @_matmul_kernel(%arg0: i32, %arg1: i32, %arg2: i32, %arg3: memref<16x32xf32, #tpu.memory_space<vmem>>, %arg4: memref<32x128xf32, #tpu.memory_space<vmem>>, %arg5: memref<16x128xf32, #tpu.memory_space<vmem>>, %arg6: memref<16x128xf32, #tpu.memory_space<vmem>>) attributes {dimension_semantics = [#tpu.dimension_semantics<parallel>, #tpu.dimension_semantics<parallel>, #tpu.dimension_semantics<arbitrary>], iteration_bounds = array<i64: 1, 1, 1>, scalar_prefetch = 0 : i64, scratch_operands = 1 : i64, tpu.core_type = #tpu.core_type<tc>, window_params = [{transform_indices = @transform_0, window_bounds = array<i64: 16, 32>}, {transform_indices = @transform_1, window_bounds = array<i64: 32, 128>}, {transform_indices = @transform_2, window_bounds = array<i64: 16, 128>}]} {
    %c0_i32 = arith.constant 0 : i32
    %0 = arith.cmpi eq, %arg2, %c0_i32 : i32
    %1 = arith.extui %0 : i1 to i32
    %c0_i32_0 = arith.constant 0 : i32
    %2 = arith.cmpi ne, %1, %c0_i32_0 : i32
    scf.if %2 {
      %cst_10 = arith.constant 0.000000e+00 : f32
      %12 = vector.broadcast %cst_10 : f32 to vector<16x128xf32>
      %c0_11 = arith.constant 0 : index
      %c0_12 = arith.constant 0 : index
      %13 = vector.load %arg6[%c0_11, %c0_12] : memref<16x128xf32, #tpu.memory_space<vmem>>, vector<16x128xf32>
      tpu.vector_store %arg6[%c0_11, %c0_12], %12 {strides = array<i32>} : memref<16x128xf32, #tpu.memory_space<vmem>>, vector<16x128xf32>,
    } else {
    }
    %c0 = arith.constant 0 : index
    %c0_1 = arith.constant 0 : index
    %3 = vector.load %arg6[%c0, %c0_1] : memref<16x128xf32, #tpu.memory_space<vmem>>, vector<16x128xf32>
    %c0_2 = arith.constant 0 : index
    %c0_3 = arith.constant 0 : index
    %4 = vector.load %arg3[%c0_2, %c0_3] : memref<16x32xf32, #tpu.memory_space<vmem>>, vector<16x32xf32>
    %c0_4 = arith.constant 0 : index
    %c0_5 = arith.constant 0 : index
    %5 = vector.load %arg4[%c0_4, %c0_5] : memref<32x128xf32, #tpu.memory_space<vmem>>, vector<32x128xf32>
    %cst = arith.constant dense<0.000000e+00> : vector<16x128xf32>
    %6 = tpu.matmul %4, %5, %cst {dimension_numbers = #tpu.dot_dimension_numbers<[1], [0], [0], [1], [0, 0, 1, 1], [], []>} : vector<16x32xf32>, vector<32x128xf32>, vector<16x128xf32> -> vector<16x128xf32>
    %7 = arith.addf %3, %6 : vector<16x128xf32>
    %c0_6 = arith.constant 0 : index
    %c0_7 = arith.constant 0 : index
    %8 = vector.load %arg6[%c0_6, %c0_7] : memref<16x128xf32, #tpu.memory_space<vmem>>, vector<16x128xf32>
    tpu.vector_store %arg6[%c0_6, %c0_7], %7 {strides = array<i32>} : memref<16x128xf32, #tpu.memory_space<vmem>>, vector<16x128xf32>,
    %c0_i32_8 = arith.constant 0 : i32
    %9 = arith.cmpi eq, %arg2, %c0_i32_8 : i32
    %10 = arith.extui %9 : i1 to i32
    %c0_i32_9 = arith.constant 0 : i32
    %11 = arith.cmpi ne, %10, %c0_i32_9 : i32
    scf.if %11 {
      %c0_10 = arith.constant 0 : index
      %c0_11 = arith.constant 0 : index
      %12 = vector.load %arg6[%c0_10, %c0_11] : memref<16x128xf32, #tpu.memory_space<vmem>>, vector<16x128xf32>
      %c0_12 = arith.constant 0 : index
      %c0_13 = arith.constant 0 : index
      %13 = vector.load %arg5[%c0_12, %c0_13] : memref<16x128xf32, #tpu.memory_space<vmem>>, vector<16x128xf32>
      tpu.vector_store %arg5[%c0_12, %c0_13], %12 {strides = array<i32>} : memref<16x128xf32, #tpu.memory_space<vmem>>, vector<16x128xf32>,
    } else {
    }
    return
  }
  func.func @transform_0(%arg0: i32, %arg1: i32, %arg2: i32) -> (i32, i32) {
    %c0_i32 = arith.constant 0 : i32
    return %arg0, %arg2 : i32, i32
  }
  func.func @transform_1(%arg0: i32, %arg1: i32, %arg2: i32) -> (i32, i32) {
    %c0_i32 = arith.constant 0 : i32
    return %arg2, %arg1 : i32, i32
  }
  func.func @transform_2(%arg0: i32, %arg1: i32, %arg2: i32) -> (i32, i32) {
    %c0_i32 = arith.constant 0 : i32
    return %arg0, %arg1 : i32, i32
  }
}

</mosaic_0001>

<bundles_post_ra>
// kernel: tpu_custom_call.1
= control target key start
LH: loop header
LB: loop body
LE: loop exit
PB: predicated region body
PF: predicated region fallthrough
CT: control target
= control target key end

     0   :  { %7 = vsyncpa [#allocation4], 0  ;;  %s295_s0 = inlined_call_operand.hbm [shape: f32[16,32], index: 0, kind: input, shape index: {}]   ;;  %s296_s1 = inlined_call_operand.hbm [shape: f32[32,128], index: 1, kind: input, shape index: {}]   ;;  %s297_s2 = inlined_call_operand.hbm [shape: f32[16,128], index: 2, kind: output, shape index: {}]  }
   0x1   :  { %8 = vsyncpa [#allocation7], 0 }
   0x2   :  { %9 = vsyncpa [#allocation5], 0  ;;  %s255_s9 = smov [#allocation3]  }
   0x3   :  { %s15_s10 = sshll.u32 %s255_s9, 4  ;;  %s16_s10 = int_to_ptr.vmem [resolvable:$true] %s15_s10 }
   0x4   :  { %s197_s11 = scalar_lea.vmem %s16_s10, 256  ;;  %p202_p1 = scmp.lt.s32.totalorder %s16_s10, %s16_s10 }
   0x5   :  { %p198_p0 = scmp.ne.s32.totalorder %s16_s10, %s197_s11  ;;  %p203_p2 = scmp.lt.s32.totalorder %s197_s11, %s197_s11 }
   0x7   :  { %p204_p3 = por %p203_p2, %p202_p1 }
   0x9   :  { %p205_p4 = pnand %p204_p3, %p198_p0 }
   0xb   :  { %208 = shalt.err (!%p205_p4)
}
   0xc   :  { %s256_s12 = smov 128   ;;  %s257_s13 = smov 8  }
   0xd   :  { %21 = dma.hbm_to_vmem [thread:$0]  %s295_s0, 256, %s16_s10, [#allocation4], %s256_s12, %s256_s12, %s257_s13  }
   0xe   :  { %s258_s16 = smov [#allocation6]  }
   0xf   :  { %s27_s17 = sshll.u32 %s258_s16, 4  ;;  %s28_s17 = int_to_ptr.vmem [resolvable:$true] %s27_s17 }
  0x10   :  { %s217_s18 = scalar_lea.vmem %s28_s17, 512  ;;  %p222_p6 = scmp.lt.s32.totalorder %s28_s17, %s28_s17 }
  0x11   :  { %p218_p5 = scmp.ne.s32.totalorder %s28_s17, %s217_s18  ;;  %p223_p7 = scmp.lt.s32.totalorder %s217_s18, %s217_s18 }
  0x13   :  { %p224_p8 = por %p223_p7, %p222_p6 }
  0x15   :  { %p225_p9 = pnand %p224_p8, %p218_p5 }
  0x17   :  { %228 = shalt.err (!%p225_p9)
}
  0x18   :  { %33 = dma.hbm_to_vmem [thread:$0]  %s296_s1, 512, %s28_s17, [#allocation7], %s256_s12, %s256_s12, %s257_s13  }
  0x19   :  { %249 = dma.done.wait [#allocation4], 256  }
  0x1a   :  { %250 = vsyncadd [#allocation4], 4294967040 }
  0x1b   :  { %251 = dma.done.wait [#allocation7], 512  }
  0x1c   :  { %252 = vsyncadd [#allocation7], 4294966784  ;;  %vm54_vm0 = vcmask 261120   ;;  %v53_v0 = vld [vmem:[#allocation6 + $0x18] sm:$0xff]  ;;  %v52_v1 = vld [vmem:[#allocation6 + $0x10] sm:$0xff]  ;;  %s259_s0 = smov [#allocation8]  }
  0x1d   :  { %173 = vmatprep.subr.mxu0 %v53_v0  ;;  %v48_v2 = vld [vmem:[#allocation3] sm:$0xff]  ;;  %v51_v3 = vld [vmem:[#allocation6 + $0x8] sm:$0xff]  ;;  %v50_v4 = vld [vmem:[#allocation6] sm:$0xff]  ;;  %s152_s1 = sshll.u32 %s259_s0, 4  ;;  %s153_s1 = int_to_ptr.vmem [resolvable:$true] %s152_s1 }
  0x1e   :  { %174 = vmatpush3.msra.mxu0 %v53_v0  ;;  %181 = vmatprep.mubr.msk.f32.mxu0 %vm54_vm0, %v48_v2  ;;  %v49_v5 = vld [vmem:[#allocation3 + $0x8] sm:$0xff]  ;;  %s229_s21 = scalar_lea.vmem %s153_s1, 256  ;;  %p234_p11 = scmp.lt.s32.totalorder %s153_s1, %s153_s1 }
  0x1f   :  { %175 = vmatprep.subr.mxu0 %v52_v1  ;;  %p230_p10 = scmp.ne.s32.totalorder %s153_s1, %s229_s21  ;;  %p235_p12 = scmp.lt.s32.totalorder %s229_s21, %s229_s21 }
  0x20   :  { %176 = vmatpush3.msra.mxu0 %v52_v1 }
  0x21   :  { %177 = vmatprep.subr.mxu0 %v51_v3  ;;  %p236_p13 = por %p235_p12, %p234_p11 }
  0x22   :  { %178 = vmatpush3.msra.mxu0 %v51_v3 }
  0x23   :  { %179 = vmatprep.subr.mxu0 %v50_v4  ;;  %p237_p0 = pnand %p236_p13, %p230_p10 }
  0x24   :  { %180 = vmatpush3.msra.mxu0 %v50_v4 }
  0x25   :  { %182 = vmatmul.mubr.msk.f32.vlgmr.msra.gmra.mxu0 %vm54_vm0, %v49_v5 }
  0xe5   :  { %v183_v6 = vpop.f32.mrf.mxu0 }
  0xe6   :  { %146 = vst [vmem:[#allocation8 + $0x8] sm:$0xff] %v183_v6 }
  0xe7   :  { %v127_v7 = vpop.f32.mrf.mxu0 }
  0xe8   :  { %145 = vst [vmem:[#allocation8] sm:$0xff] %v127_v7 }
  0xe9   :  { %240 = shalt.err (!%p237_p0)
}
  0xea   :  { %158 = dma.vmem_to_hbm [thread:$0]  %s153_s1, 256, %s297_s2, [#allocation5], %s256_s12, %s256_s12, %s257_s13  }
  0xeb   :  { %253 = dma.done.wait [#allocation5], 256  }
  0xec   :  { %254 = vsyncadd [#allocation5], 4294967040 }
  0xed   :  { %162 = vsyncpa [#allocation4], 1 }
  0xee   :  { %163 = vsyncpa [#allocation7], 1 }
  0xef   :  { %164 = vsyncpa [#allocation5], 1 }

</bundles_post_ra>
